<compile_context>
chip_gen: v7x
topology: tpu7x:2x2x1
jax: 0.10.0
libtpu: 0.0.40
codegen_flags: <defaults>
</compile_context>

<pallas_src>
import jax
import jax.numpy as jnp
from jax import lax
from jax.experimental import pallas as pl
from jax.experimental.pallas import tpu as pltpu


def _end2end_kernel(ctx_ref, inp_ref,
                    w1_ref, b1_ref,
                    w23_ref, w3b_ref, b23_ref,
                    w4t_ref, b4t_ref,
                    out_ref):
    # --- context_encoder layer 1 (bf16 MXU operands, f32 accumulation) ---
    ctx = ctx_ref[...].astype(jnp.bfloat16)
    h1 = jnp.dot(ctx, w1_ref[...],
                 preferred_element_type=jnp.float32) + b1_ref[...]
    h1 = jnp.maximum(h1, 0.0)                                    # ReLU

    # --- fused (encoder Linear#2 + decoder Linear#1) on the concat ---
    # cat([ctx_enc, inp], 1) @ W3 == (h1 @ W2 + b2) @ W3a + inp * W3b + b3
    #                             == h1 @ (W2 @ W3a) + inp * W3b + (b2 @ W3a + b3)
    h3 = (jnp.dot(h1.astype(jnp.bfloat16), w23_ref[...],
                  preferred_element_type=jnp.float32)
          + inp_ref[...] * w3b_ref[...]          # (tb,1) * (1,hidden) on VPU
          + b23_ref[...])
    h3 = jnp.maximum(h3, 0.0)                                    # ReLU

    # --- final layer, lane-dense (out_size, tb): out_t = W4^T @ h3^T ---
    out_t = lax.dot_general(
        w4t_ref[...], h3.astype(jnp.bfloat16),
        dimension_numbers=(((1,), (1,)), ((), ())),
        preferred_element_type=jnp.float32)
    out_ref[...] = (out_t + b4t_ref[...]).astype(out_ref.dtype)


def end2end_forward(context, inp, params, *, block_b=8192):
    """context: (B, context_size) f32; inp: (B, 1) f32 -> (B, output_size) f32."""
    (w1, b1, w2, b2, w3, b3, w4, b4) = params
    ctx_size = w1.shape[0]
    hidden = w2.shape[1]
    out_size = w4.shape[1]
    B = context.shape[0]

    # Host-side algebraic fusion (no ReLU between encoder L2 and decoder L1).
    w3a = w3[:hidden, :]                  # (hidden, hidden)  acts on ctx_enc
    w3b = w3[hidden:, :]                  # (1, hidden)       acts on `input` col
    w23 = w2 @ w3a                        # (hidden, hidden)
    b23 = b2 @ w3a + b3                   # (1, hidden)
    w4t = w4.T                            # (out_size, hidden)
    b4t = b4.reshape(out_size, 1)         # (out_size, 1)

    # Weights cast to bf16 once (activations cast in-kernel); f32 accumulation
    # is preserved via preferred_element_type.
    w1_bf = w1.astype(jnp.bfloat16)
    w23_bf = w23.astype(jnp.bfloat16)
    w4t_bf = w4t.astype(jnp.bfloat16)

    # Batch tile: multiple of 128 (lane-dense output tiling), large enough to
    # amortize the ~0.35us per-grid-step overhead, capped so the lane-padded
    # (tb, ctx)/(tb, 1) double-buffered tiles stay well under v7x's 64 MiB
    # VMEM.  For B beyond a trivial size, force >= 2 grid steps so the
    # "parallel" axis uses both v7x TensorCores.
    if B <= 256:
        tb = B                             # tiny batch: single tile
    else:
        tb = max(128, (min(block_b, 16384) // 128) * 128)
        if pl.cdiv(B, tb) < 2:
            tb = ((pl.cdiv(B, 2) + 127) // 128) * 128
    nb = pl.cdiv(B, tb)

    const = lambda i: (0, 0)               # weights/biases: resident, DMA'd once

    out_t = pl.pallas_call(
        _end2end_kernel,
        out_shape=jax.ShapeDtypeStruct((out_size, B), jnp.float32),
        grid=(nb,),
        in_specs=[
            pl.BlockSpec((tb, ctx_size), lambda i: (i, 0)),      # context tile
            pl.BlockSpec((tb, 1), lambda i: (i, 0)),             # input tile
            pl.BlockSpec((ctx_size, hidden), const),             # w1 (bf16)
            pl.BlockSpec((1, hidden), const),                    # b1
            pl.BlockSpec((hidden, hidden), const),               # W23 (bf16)
            pl.BlockSpec((1, hidden), const),                    # w3b
            pl.BlockSpec((1, hidden), const),                    # b23
            pl.BlockSpec((out_size, hidden), const),             # W4^T (bf16)
            pl.BlockSpec((out_size, 1), const),                  # b4^T
        ],
        out_specs=pl.BlockSpec((out_size, tb), lambda i: (0, i)),
        compiler_params=pltpu.CompilerParams(
            dimension_semantics=("parallel",),
            vmem_limit_bytes=48 * 1024 * 1024,
        ),
    )(context, inp, w1_bf, b1, w23_bf, w3b, b23, w4t_bf, b4t)

    return out_t.T                         # (B, out_size)


def init_params(key, context_size=8, hidden_size=32, output_size=1):
    """Deterministic synthetic parameters (stored as (in, out) matrices)."""
    ks = jax.random.split(key, 8)

    def dense(k, fan_in, fan_out):
        bound = 1.0 / jnp.sqrt(fan_in)
        return jax.random.uniform(k, (fan_in, fan_out), jnp.float32,
                                  minval=-bound, maxval=bound)

    w1 = dense(ks[0], context_size, hidden_size)
    b1 = jax.random.uniform(ks[1], (1, hidden_size), jnp.float32, -0.1, 0.1)
    w2 = dense(ks[2], hidden_size, hidden_size)
    b2 = jax.random.uniform(ks[3], (1, hidden_size), jnp.float32, -0.1, 0.1)
    w3 = dense(ks[4], hidden_size + 1, hidden_size)
    b3 = jax.random.uniform(ks[5], (1, hidden_size), jnp.float32, -0.1, 0.1)
    w4 = dense(ks[6], hidden_size, output_size)
    b4 = jax.random.uniform(ks[7], (1, output_size), jnp.float32, -0.1, 0.1)
    return (w1, b1, w2, b2, w3, b3, w4, b4)


def _reference(context, inp, params):
    """Pure-JAX f32 reference mirroring the PyTorch forward exactly."""
    (w1, b1, w2, b2, w3, b3, w4, b4) = params
    h = jnp.maximum(context @ w1 + b1, 0.0)
    ctx_enc = h @ w2 + b2
    combined = jnp.concatenate([ctx_enc, inp], axis=1)
    h = jnp.maximum(combined @ w3 + b3, 0.0)
    return h @ w4 + b4


if __name__ == "__main__":
    key = jax.random.PRNGKey(0)
    k_data, k_par = jax.random.split(key, 2)

    context_size, hidden_size, output_size = 8, 32, 1
    params = init_params(k_par, context_size, hidden_size, output_size)

    # Cases: tiny single-tile batch; multi-tile with partial last tile; and a
    # medium batch exercising the ">=2 grid steps" tile-selection path.
    for B, block_b in ((2, 8192), (300, 128), (1000, 8192)):
        kc, ki = jax.random.split(jax.random.fold_in(k_data, B))
        context = jax.random.normal(kc, (B, context_size), jnp.float32)
        inp = jax.random.normal(ki, (B, 1), jnp.float32)

        out = jax.block_until_ready(
            end2end_forward(context, inp, params, block_b=block_b))
        ref = _reference(context, inp, params)

        assert out.shape == (B, output_size), out.shape
        # Tolerance accounts for bf16 MXU operands (f32 accumulation); the
        # observed error for this network is ~1e-2 absolute.
        assert jnp.allclose(out, ref, atol=5e-2, rtol=5e-2), (
            float(jnp.max(jnp.abs(out - ref))))

    print("KERNEL_OK")
</pallas_src>

<mosaic_0001>
module attributes {stable_mosaic.version = 11 : i64} {
  func.func @_end2end_kernel(%arg0: i32, %arg1: memref<2x8xf32, #tpu.memory_space<vmem>>, %arg2: memref<2x1xf32, #tpu.memory_space<vmem>>, %arg3: memref<8x32xbf16, #tpu.memory_space<vmem>>, %arg4: memref<1x32xf32, #tpu.memory_space<vmem>>, %arg5: memref<32x32xbf16, #tpu.memory_space<vmem>>, %arg6: memref<1x32xf32, #tpu.memory_space<vmem>>, %arg7: memref<1x32xf32, #tpu.memory_space<vmem>>, %arg8: memref<1x32xbf16, #tpu.memory_space<vmem>>, %arg9: memref<1x1xf32, #tpu.memory_space<vmem>>, %arg10: memref<1x2xf32, #tpu.memory_space<vmem>>) attributes {dimension_semantics = [#tpu.dimension_semantics<parallel>], iteration_bounds = array<i64: 1>, scalar_prefetch = 0 : i64, scratch_operands = 0 : i64, tpu.core_type = #tpu.core_type<tc>, window_params = [{transform_indices = @transform_0, window_bounds = array<i64: 2, 8>}, {transform_indices = @transform_1, window_bounds = array<i64: 2, 1>}, {pipeline_mode = #tpu.pipeline_mode<synchronous>, transform_indices = @transform_2, window_bounds = array<i64: 8, 32>}, {pipeline_mode = #tpu.pipeline_mode<synchronous>, transform_indices = @transform_3, window_bounds = array<i64: 1, 32>}, {pipeline_mode = #tpu.pipeline_mode<synchronous>, transform_indices = @transform_4, window_bounds = array<i64: 32, 32>}, {pipeline_mode = #tpu.pipeline_mode<synchronous>, transform_indices = @transform_5, window_bounds = array<i64: 1, 32>}, {pipeline_mode = #tpu.pipeline_mode<synchronous>, transform_indices = @transform_6, window_bounds = array<i64: 1, 32>}, {pipeline_mode = #tpu.pipeline_mode<synchronous>, transform_indices = @transform_7, window_bounds = array<i64: 1, 32>}, {pipeline_mode = #tpu.pipeline_mode<synchronous>, transform_indices = @transform_8, window_bounds = array<i64: 1, 1>}, {transform_indices = @transform_9, window_bounds = array<i64: 1, 2>}]} {
    %c0 = arith.constant 0 : index
    %c0_0 = arith.constant 0 : index
    %0 = vector.load %arg1[%c0, %c0_0] : memref<2x8xf32, #tpu.memory_space<vmem>>, vector<2x8xf32>
    %1 = arith.truncf %0 : vector<2x8xf32> to vector<2x8xbf16>
    %c0_1 = arith.constant 0 : index
    %c0_2 = arith.constant 0 : index
    %2 = vector.load %arg3[%c0_1, %c0_2] : memref<8x32xbf16, #tpu.memory_space<vmem>>, vector<8x32xbf16>
    %cst = arith.constant dense<0.000000e+00> : vector<2x32xf32>
    %3 = tpu.matmul %1, %2, %cst {dimension_numbers = #tpu.dot_dimension_numbers<[1], [0], [0], [1], [0, 0, 1, 1], [], []>} : vector<2x8xbf16>, vector<8x32xbf16>, vector<2x32xf32> -> vector<2x32xf32>
    %c0_3 = arith.constant 0 : index
    %c0_4 = arith.constant 0 : index
    %4 = vector.load %arg4[%c0_3, %c0_4] : memref<1x32xf32, #tpu.memory_space<vmem>>, vector<1x32xf32>
    %5 = vector.broadcast %4 : vector<1x32xf32> to vector<2x32xf32>
    %6 = arith.addf %3, %5 : vector<2x32xf32>
    %cst_5 = arith.constant 0.000000e+00 : f32
    %7 = vector.broadcast %cst_5 : f32 to vector<2x32xf32>
    %8 = arith.maximumf %6, %7 : vector<2x32xf32>
    %9 = arith.truncf %8 : vector<2x32xf32> to vector<2x32xbf16>
    %c0_6 = arith.constant 0 : index
    %c0_7 = arith.constant 0 : index
    %10 = vector.load %arg5[%c0_6, %c0_7] : memref<32x32xbf16, #tpu.memory_space<vmem>>, vector<32x32xbf16>
    %cst_8 = arith.constant dense<0.000000e+00> : vector<2x32xf32>
    %11 = tpu.matmul %9, %10, %cst_8 {dimension_numbers = #tpu.dot_dimension_numbers<[1], [0], [0], [1], [0, 0, 1, 1], [], []>} : vector<2x32xbf16>, vector<32x32xbf16>, vector<2x32xf32> -> vector<2x32xf32>
    %c0_9 = arith.constant 0 : index
    %c0_10 = arith.constant 0 : index
    %12 = vector.load %arg2[%c0_9, %c0_10] : memref<2x1xf32, #tpu.memory_space<vmem>>, vector<2x1xf32>
    %c0_11 = arith.constant 0 : index
    %c0_12 = arith.constant 0 : index
    %13 = vector.load %arg6[%c0_11, %c0_12] : memref<1x32xf32, #tpu.memory_space<vmem>>, vector<1x32xf32>
    %14 = vector.broadcast %12 : vector<2x1xf32> to vector<2x32xf32>
    %15 = vector.broadcast %13 : vector<1x32xf32> to vector<2x32xf32>
    %16 = arith.mulf %14, %15 : vector<2x32xf32>
    %17 = arith.addf %11, %16 : vector<2x32xf32>
    %c0_13 = arith.constant 0 : index
    %c0_14 = arith.constant 0 : index
    %18 = vector.load %arg7[%c0_13, %c0_14] : memref<1x32xf32, #tpu.memory_space<vmem>>, vector<1x32xf32>
    %19 = vector.broadcast %18 : vector<1x32xf32> to vector<2x32xf32>
    %20 = arith.addf %17, %19 : vector<2x32xf32>
    %cst_15 = arith.constant 0.000000e+00 : f32
    %21 = vector.broadcast %cst_15 : f32 to vector<2x32xf32>
    %22 = arith.maximumf %20, %21 : vector<2x32xf32>
    %c0_16 = arith.constant 0 : index
    %c0_17 = arith.constant 0 : index
    %23 = vector.load %arg8[%c0_16, %c0_17] : memref<1x32xbf16, #tpu.memory_space<vmem>>, vector<1x32xbf16>
    %24 = arith.truncf %22 : vector<2x32xf32> to vector<2x32xbf16>
    %cst_18 = arith.constant dense<0.000000e+00> : vector<1x2xf32>
    %25 = tpu.matmul %23, %24, %cst_18 {dimension_numbers = #tpu.dot_dimension_numbers<[1], [1], [0], [0], [0, 0, 1, 0], [], []>} : vector<1x32xbf16>, vector<2x32xbf16>, vector<1x2xf32> -> vector<1x2xf32>
    %c0_19 = arith.constant 0 : index
    %c0_20 = arith.constant 0 : index
    %26 = vector.load %arg9[%c0_19, %c0_20] : memref<1x1xf32, #tpu.memory_space<vmem>>, vector<1x1xf32>
    %27 = vector.broadcast %26 : vector<1x1xf32> to vector<1x2xf32>
    %28 = arith.addf %25, %27 : vector<1x2xf32>
    %c0_21 = arith.constant 0 : index
    %c0_22 = arith.constant 0 : index
    %29 = vector.load %arg10[%c0_21, %c0_22] : memref<1x2xf32, #tpu.memory_space<vmem>>, vector<1x2xf32>
    tpu.vector_store %arg10[%c0_21, %c0_22], %28 {strides = array<i32>} : memref<1x2xf32, #tpu.memory_space<vmem>>, vector<1x2xf32>,
    return
  }
  func.func @transform_0(%arg0: i32) -> (i32, i32) {
    %c0_i32 = arith.constant 0 : i32
    %c0_i32_0 = arith.constant 0 : i32
    return %arg0, %c0_i32 : i32, i32
  }
  func.func @transform_1(%arg0: i32) -> (i32, i32) {
    %c0_i32 = arith.constant 0 : i32
    %c0_i32_0 = arith.constant 0 : i32
    return %arg0, %c0_i32 : i32, i32
  }
  func.func @transform_2(%arg0: i32) -> (i32, i32) {
    %c0_i32 = arith.constant 0 : i32
    %c0_i32_0 = arith.constant 0 : i32
    %c0_i32_1 = arith.constant 0 : i32
    return %c0_i32, %c0_i32_0 : i32, i32
  }
  func.func @transform_3(%arg0: i32) -> (i32, i32) {
    %c0_i32 = arith.constant 0 : i32
    %c0_i32_0 = arith.constant 0 : i32
    %c0_i32_1 = arith.constant 0 : i32
    return %c0_i32, %c0_i32_0 : i32, i32
  }
  func.func @transform_4(%arg0: i32) -> (i32, i32) {
    %c0_i32 = arith.constant 0 : i32
    %c0_i32_0 = arith.constant 0 : i32
    %c0_i32_1 = arith.constant 0 : i32
    return %c0_i32, %c0_i32_0 : i32, i32
  }
  func.func @transform_5(%arg0: i32) -> (i32, i32) {
    %c0_i32 = arith.constant 0 : i32
    %c0_i32_0 = arith.constant 0 : i32
    %c0_i32_1 = arith.constant 0 : i32
    return %c0_i32, %c0_i32_0 : i32, i32
  }
  func.func @transform_6(%arg0: i32) -> (i32, i32) {
    %c0_i32 = arith.constant 0 : i32
    %c0_i32_0 = arith.constant 0 : i32
    %c0_i32_1 = arith.constant 0 : i32
    return %c0_i32, %c0_i32_0 : i32, i32
  }
  func.func @transform_7(%arg0: i32) -> (i32, i32) {
    %c0_i32 = arith.constant 0 : i32
    %c0_i32_0 = arith.constant 0 : i32
    %c0_i32_1 = arith.constant 0 : i32
    return %c0_i32, %c0_i32_0 : i32, i32
  }
  func.func @transform_8(%arg0: i32) -> (i32, i32) {
    %c0_i32 = arith.constant 0 : i32
    %c0_i32_0 = arith.constant 0 : i32
    %c0_i32_1 = arith.constant 0 : i32
    return %c0_i32, %c0_i32_0 : i32, i32
  }
  func.func @transform_9(%arg0: i32) -> (i32, i32) {
    %c0_i32 = arith.constant 0 : i32
    %c0_i32_0 = arith.constant 0 : i32
    return %c0_i32, %arg0 : i32, i32
  }
}

</mosaic_0001>

<bundles_post_ra>
// kernel: tpu_custom_call.1
= control target key start
LH: loop header
LB: loop body
LE: loop exit
PB: predicated region body
PF: predicated region fallthrough
CT: control target
= control target key end

     0   :  { %s466_s0 = inlined_call_operand.vmem [shape: f32[2,8], index: 0, kind: input, shape index: {}]   ;;  %s467_s1 = inlined_call_operand.vmem [shape: f32[2,1], index: 1, kind: input, shape index: {}]   ;;  %s468_s2 = inlined_call_operand.vmem [shape: bf16[8,32], index: 2, kind: input, shape index: {}]   ;;  %s469_s3 = inlined_call_operand.hbm [shape: f32[1,32], index: 3, kind: input, shape index: {}]   ;;  %s470_s4 = inlined_call_operand.vmem [shape: bf16[32,32], index: 4, kind: input, shape index: {}]   ;;  %s471_s5 = inlined_call_operand.vmem [shape: f32[1,32], index: 5, kind: input, shape index: {}]   ;;  %s472_s6 = inlined_call_operand.vmem [shape: f32[1,32], index: 6, kind: input, shape index: {}]   ;;  %s473_s7 = inlined_call_operand.vmem [shape: bf16[1,32], index: 7, kind: input, shape index: {}]   ;;  %s474_s8 = inlined_call_operand.<no memory space> [shape: f32[1,1], index: 8, kind: input, shape index: {}]   ;;  %s475_s9 = inlined_call_operand.hbm [shape: f32[1,2], index: 9, kind: output, shape index: {}]  }
   0x1   :  { %v14_v0 = vstv %s474_s8 }
   0x2   :  { %15 = vst [vmem:[#allocation2] sm:$0x1] %v14_v0 }
   0x3   :  { %16 = vsyncpa [#allocation4], 0 }
   0x4   :  { %17 = vsyncpa [#allocation5], 0  ;;  %s357_s11 = smov [#allocation3]   ;;  %s309_s15 = scalar_lea.hbm %s469_s3, 16 }
   0x5   :  { %s30_s12 = sshll.u32 %s357_s11, 4  ;;  %p310_p0 = scmp.ne.s32.totalorder %s469_s3, %s309_s15  ;;  %s31_s12 = int_to_ptr.vmem [resolvable:$true] %s30_s12 }
   0x6   :  { %p313_p1 = scmp.lt.u32.totalorder %s309_s15, %s469_s3 }
   0x8   :  { %p315_p2 = pnand %p313_p1, %p310_p0 }
   0xa   :  { %318 = shalt.err (!%p315_p2)
}
   0xb   :  { %s319_s8 = scalar_lea.vmem %s31_s12, 16  ;;  %s323_s20 = scalar_lea.vmem %s31_s12, 32 }
   0xc   :  { %p320_p3 = scmp.ne.s32.totalorder %s31_s12, %s319_s8  ;;  %p324_p4 = scmp.lt.s32.totalorder %s31_s12, %s31_s12 }
   0xd   :  { %p325_p5 = scmp.lt.s32.totalorder %s323_s20, %s319_s8 }
   0xf   :  { %p326_p6 = por %p325_p5, %p324_p4 }
  0x11   :  { %p327_p7 = pnand %p326_p6, %p320_p3 }
  0x13   :  { %330 = shalt.err (!%p327_p7)
}
  0x14   :  { %33 = dma.hbm_to_vmem [thread:$0]  %s469_s3, 16, %s31_s12, [#allocation4]  }
  0x15   :  { %353 = dma.done.wait [#allocation4], 16  }
  0x16   :  { %354 = vsyncadd [#allocation4], 4294967280  ;;  %v358_v1 = vmov 0.0   ;;  %vm359_vm0 = vmmov 0   ;;  %vm62_vm1 = vcmask 1043456   ;;  %vm58_vm2 = vcmask 64512  }
  0x17   :  { %281 = vmatprep.subr.bf16.mxu0 %v358_v1  ;;  %283 = vmatprep.mubr.msk.bf16.mxu0 %vm359_vm0, %v358_v1  ;;  %v50_v2 = vld [vmem:[%s468_s2] sm:$0xf]  ;;  %v308_v7 = vld [vmem:[%s470_s4 + $0x8] sm:$0xff]   ;;  %v360_v9 = vmov 0   ;;  %vm138_vm3 = vcmask 261120   ;;  %v199_v33 = vlaneseq  ;;  %vm249_vm4 = vcmask 8192  }
  0x18   :  { %287 = vmatprep.subr.bf16.mxu1 %v358_v1  ;;  %291 = vmatprep.mubr.msk.bf16.mxu1 %vm359_vm0, %v358_v1  ;;  %v48_v3 = vld [vmem:[%s466_s0] sm:$0x3]  ;;  %v64_v4 = vsel %vm62_vm1, %v50_v2, 0 }
  0x19   :  { %v49_v5 = vpack.c.bf16 %v48_v3, %v48_v3  ;;  %282 = vmatpush3.bf16.msra.mxu0 %v64_v4  ;;  %v307_v6 = vld [vmem:[%s470_s4] sm:$0xff]   ;;  %306 = vset.pattern.permute.xlu0 %v360_v9  ;;  %v200_v34 = vshrl.u32 %v199_v33, 7 }
  0x1a   :  { %295 = vmatprep.subr.bf16.mxu0 %v358_v1  ;;  %288 = vmatpush3.bf16.msra.mxu1 %v307_v6  ;;  %v112_v8 = vld [vmem:[%s467_s1] sm:$0x3] }
  0x1b   :  { %289 = vmatprep.subr.bf16.mxu1 %v358_v1  ;;  %116 = vperm.xlu0 %306, %v112_v8   ;;  %v193_v10 = vld [vmem:[#allocation2] sm:$0x1]  ;;  %v266_v11 = vld [vmem:[#allocation3] ss:$0 sm:$0xff]  ;;  %v201_v35 = vsub.s32 0, %v200_v34 }
  0x1c   :  { %284 = vmatmul.mubr.msk.bf16.vlgmr.msra.gmra.mrb[0].mxu0 %vm58_vm2, %v49_v5  ;;  %v268_v19 = vld [vmem:[%s471_s5] ss:$0 sm:$0xff]  ;;  %s361_s5 = smov [#allocation6]  }
  0x1d   :  { %297 = vmatprep.mubr.msk.bf16.mxu0 %vm359_vm0, %v358_v1  ;;  %v272_v23 = vld [vmem:[%s472_s6] ss:$0 sm:$0xff]  ;;  %s257_s6 = sshll.u32 %s361_s5, 4  ;;  %s258_s6 = int_to_ptr.vmem [resolvable:$true] %s257_s6 }
  0x1e   :  { %290 = vmatpush3.bf16.msra.mxu1 %v308_v7  ;;  %v191_v32 = vld [vmem:[%s473_s7] sm:$0x1]  ;;  %s331_s13 = scalar_lea.vmem %s258_s6, 16  ;;  %s335_s7 = scalar_lea.vmem %s258_s6, 32 }
  0x1f   :  { %196 = vperm.xlu0 %306, %v193_v10   ;;  %p332_p8 = scmp.ne.s32.totalorder %s258_s6, %s331_s13  ;;  %p336_p9 = scmp.lt.s32.totalorder %s258_s6, %s258_s6 }
  0x20   :  { %p337_p10 = scmp.lt.s32.totalorder %s335_s7, %s331_s13 }
  0x22   :  { %p338_p11 = por %p337_p10, %p336_p9 }
  0x24   :  { %p339_p12 = pnand %p338_p11, %p332_p8 }
  0x9a   :  { %v117_v20 = vpop.permute.xlu0 %116 }
  0x9b   :  { %v125_v21 = vmul.f32 %v268_v19, %v117_v20 }
  0x9e   :  { %v197_v36 = vpop.permute.xlu0 %196 }
  0x9f   :  { %v202_v37 = vrot.slane %v197_v36, %v201_v35 }
  0xef   :  { %v100_v12 = vpop.f32.mrb[0].mxu0 }
  0xf0   :  { %v101_v13 = vadd.f32 %v266_v11, %v100_v12  ;;  %v285_v14 = vpop.f32.mrb[1].mxu0 }
  0xf1   :  { %v103_v15 = vpop.f32.mrb[2].mxu0 }
  0xf2   :  { %v106_v16 = vmax.f32 %v101_v13, 0.0  ;;  %v286_v17 = vpop.f32.mrb[3].mxu0 }
  0xf4   :  { %v107_v18 = vpack.c.bf16 %v106_v16, %v106_v16 }
  0xf6   :  { %292 = vmatmul.mubr.msk.bf16.vlgmr.msra.gmra.mrb[0].mxu1 %vm138_vm3, %v107_v18 }
 0x1c9   :  { %v176_v22 = vpop.f32.mrb[0].mxu1 }
 0x1ca   :  { %v177_v24 = vadd.f32 %v176_v22, %v125_v21  ;;  %v293_v25 = vpop.f32.mrb[1].mxu1 }
 0x1cb   :  { %v179_v26 = vpop.f32.mrb[2].mxu1 }
 0x1cc   :  { %v189_v27 = vadd.f32 %v272_v23, %v177_v24  ;;  %v294_v28 = vpop.f32.mrb[3].mxu1 }
 0x1ce   :  { %v190_v29 = vmax.f32 %v189_v27, 0.0 }
 0x1d0   :  { %v192_v30 = vpack.c.bf16 %v190_v29, %v190_v29 }
 0x1d2   :  { %v207_v31 = vsel %vm138_vm3, %v192_v30, 0 }
 0x1d3   :  { %296 = vmatpush3.bf16.xpose.msra.mxu0 %v207_v31 }
 0x1da   :  { %298 = vmatmul.mubr.msk.bf16.vlgmr.msra.gmra.mrb[4].mxu0 %vm138_vm3, %v191_v32 }
 0x2ad   :  { %v243_v38 = vpop.f32.mrb[4].mxu0 }
 0x2ae   :  { %v244_v39 = vadd.f32 %v243_v38, %v202_v37  ;;  %v299_v40 = vpop.f32.mrb[5].mxu0 }
 0x2af   :  { %v246_v41 = vpop.f32.mrb[6].mxu0 }
 0x2b0   :  { %v300_v42 = vpop.f32.mrb[7].mxu0  ;;  %250 = vst.msk [vmem:[#allocation6] sm:$0x1] %vm249_vm4, %v244_v39 }
 0x2b1   :  { %342 = shalt.err (!%p339_p12)
}
 0x2b2   :  { %s343_s16 = scalar_lea.hbm %s475_s9, 16 }
 0x2b3   :  { %p344_p13 = scmp.ne.s32.totalorder %s475_s9, %s343_s16  ;;  %p347_p0 = scmp.lt.u32.totalorder %s343_s16, %s475_s9 }
 0x2b5   :  { %p349_p1 = pnand %p347_p0, %p344_p13 }
 0x2b7   :  { %352 = shalt.err (!%p349_p1)
}
 0x2b8   :  { %260 = dma.vmem_to_hbm [thread:$0]  %s258_s6, 16, %s475_s9, [#allocation5]  }
 0x2b9   :  { %355 = dma.done.wait [#allocation5], 16  }
 0x2ba   :  { %356 = vsyncadd [#allocation5], 4294967280 }
 0x2bb   :  { %264 = vsyncpa [#allocation4], 1 }
 0x2bc   :  { %265 = vsyncpa [#allocation5], 1 }

</bundles_post_ra>
